<compile_context>
chip_gen: v7x
topology: tpu7x:2x2x1
jax: 0.10.0
libtpu: 0.0.40
codegen_flags: <defaults>
</compile_context>

<pallas_src>
import functools

import jax
import jax.numpy as jnp
from jax.experimental import pallas as pl
from jax.experimental.pallas import tpu as pltpu

BN_EPS = 1e-5


# --------------------------------------------------------------------------
# Small path: whole problem in one VMEM block, one launch.
# --------------------------------------------------------------------------
def _fp_fused_kernel(z_ref, w1_ref, b1_ref, gb_ref, w2_ref, b2_ref, out_ref,
                     *, batch, n_ch):
    # z_ref: (B*N, D)  w1_ref: (D, D)  b1_ref: (1, D)  gb_ref: (2, N, 1)
    # w2_ref: (D, P)   b2_ref: (1, P)  out_ref: (B*N, P)
    D = w1_ref.shape[0]
    rows = batch * n_ch

    # ---- Linear 1 on the flattened 2-D view: one MXU matmul ----
    h = jnp.dot(z_ref[...], w1_ref[...], preferred_element_type=jnp.float32)
    h = h + b1_ref[...]                                  # (1, D) bias

    # ---- BatchNorm1d, training-mode batch statistics, channel axis == N ----
    # Leading-dim split only (lane dim D unchanged, N % 8 == 0) -> relabel.
    h3 = h.reshape(batch, n_ch, D)
    # Staged reduction: VPU over the batch axis first, then one XLU lane
    # reduce per statistic on a (1, N, D) tensor.
    bsum = jnp.sum(h3, axis=0, keepdims=True)            # (1, N, D)
    bsq = jnp.sum(h3 * h3, axis=0, keepdims=True)        # (1, N, D)
    inv_count = 1.0 / float(batch * D)
    mean = jnp.sum(bsum, axis=2, keepdims=True) * inv_count   # (1, N, 1)
    ex2 = jnp.sum(bsq, axis=2, keepdims=True) * inv_count     # (1, N, 1)
    var = ex2 - mean * mean                              # biased variance

    gamma = gb_ref[0]                                    # (N, 1), sublane layout
    beta = gb_ref[1]                                     # (N, 1)
    scale = gamma * jax.lax.rsqrt(var + BN_EPS)          # (1, N, 1), EUP rsqrt
    shift = beta - mean * scale

    # ---- affine BN + ReLU (VPU) ----
    a = jnp.maximum(h3 * scale + shift, 0.0)

    # ---- Linear 2 on the flattened 2-D view: one MXU matmul, lane-dense P ----
    out = jnp.dot(a.reshape(rows, D), w2_ref[...],
                  preferred_element_type=jnp.float32) + b2_ref[...]
    out_ref[...] = out.astype(out_ref.dtype)


# --------------------------------------------------------------------------
# Scaling path, pass 1: per-channel sum / sum-of-squares accumulation.
# --------------------------------------------------------------------------
def _fp_stats_kernel(z_ref, w1_ref, b1_ref, stats_ref, *, n_ch):
    # z_ref: (bb*N, D) row tile   stats_ref: (2, N, 1) resident accumulator
    D = w1_ref.shape[0]
    bb = z_ref.shape[0] // n_ch

    h = jnp.dot(z_ref[...], w1_ref[...], preferred_element_type=jnp.float32)
    h = h + b1_ref[...]
    h3 = h.reshape(bb, n_ch, D)

    bsum = jnp.sum(h3, axis=0, keepdims=True)            # (1, N, D)
    bsq = jnp.sum(h3 * h3, axis=0, keepdims=True)        # (1, N, D)
    psum = jnp.sum(bsum, axis=2, keepdims=True)          # (1, N, 1)
    psq = jnp.sum(bsq, axis=2, keepdims=True)            # (1, N, 1)
    partial = jnp.concatenate([psum, psq], axis=0)       # (2, N, 1)

    @pl.when(pl.program_id(0) == 0)
    def _():
        stats_ref[...] = jnp.zeros_like(stats_ref)

    stats_ref[...] += partial


# --------------------------------------------------------------------------
# Scaling path, pass 2: BN affine + ReLU + Linear2 (row axis is "parallel").
# --------------------------------------------------------------------------
def _fp_apply_kernel(stats_ref, z_ref, w1_ref, b1_ref, gb_ref, w2_ref, b2_ref,
                     out_ref, *, batch, n_ch):
    D = w1_ref.shape[0]
    rows_blk = z_ref.shape[0]
    bb = rows_blk // n_ch

    # Recompute Linear 1 for this tile (cheaper than writing h to HBM and
    # reading it back — same HBM traffic for z, no extra intermediate buffer).
    h = jnp.dot(z_ref[...], w1_ref[...], preferred_element_type=jnp.float32)
    h = h + b1_ref[...]
    h3 = h.reshape(bb, n_ch, D)

    inv_count = 1.0 / float(batch * D)
    stats = stats_ref[...]                               # (2, N, 1)
    mean = stats[0:1] * inv_count                        # (1, N, 1)
    var = stats[1:2] * inv_count - mean * mean

    gamma = gb_ref[0]                                    # (N, 1)
    beta = gb_ref[1]
    scale = gamma * jax.lax.rsqrt(var + BN_EPS)
    shift = beta - mean * scale

    a = jnp.maximum(h3 * scale + shift, 0.0)
    out = jnp.dot(a.reshape(rows_blk, D), w2_ref[...],
                  preferred_element_type=jnp.float32) + b2_ref[...]
    out_ref[...] = out.astype(out_ref.dtype)


# --------------------------------------------------------------------------
# Wrapper
# --------------------------------------------------------------------------
def _choose_block_b(B, N, D, P):
    """Largest divisor of B whose double-buffered row tile stays well under the
    smallest per-generation scoped-VMEM budget (v5e default 16 MiB, v7x has
    only 64 MiB physical VMEM / 32 MiB default scoped)."""
    per_b_bytes = 4 * N * (2 * D + P)        # z tile + h + out tile per batch row
    cap = max(1, (4 << 20) // (2 * per_b_bytes))
    for d in range(min(B, cap), 0, -1):
        if B % d == 0:
            return d
    return 1


def future_predictor(z, params, *, block_b=None):
    """z: (B, N, D) float32.  N must equal latent_dim (PyTorch BN constraint).

    Training-mode BatchNorm (batch statistics, biased variance) is hard-coded,
    matching the PyTorch module's default state.
    """
    B, N, D = z.shape
    C = params["gb"].shape[1]
    P = params["w2"].shape[1]
    if N != C:
        raise ValueError(
            "BatchNorm1d(latent_dim) on a 3-D input requires N == latent_dim")
    assert params["w1"].shape == (D, D)

    rows = B * N
    z2 = z.reshape(rows, D)                  # free, contiguous flatten in HBM

    # ---- path selection ----
    if block_b is None:
        total_bytes = 4 * (rows * (2 * D + P) + D * (D + P) + D + P + 2 * N)
        # Stay single-block (one launch, latency-bound regime) while the whole
        # f32 working set fits comfortably under every generation's default
        # scoped-VMEM limit; otherwise switch to the gridded two-pass path.
        block_b = B if total_bytes <= (8 << 20) else _choose_block_b(B, N, D, P)
    block_b = min(block_b, B)
    if block_b < B and (B % block_b != 0 or (block_b * N) % 8 != 0):
        block_b = B                          # avoid ragged / misaligned tiles

    apply_cost = pl.CostEstimate(
        flops=2 * rows * D * (D + P) + 8 * rows * D,
        transcendentals=N,
        bytes_accessed=4 * (rows * (D + P) + D * (D + P) + D + P + 2 * N))

    if block_b >= B:
        # ---------- single fused launch ----------
        vmem = pl.BlockSpec(memory_space=pltpu.MemorySpace.VMEM)
        out2 = pl.pallas_call(
            functools.partial(_fp_fused_kernel, batch=B, n_ch=N),
            out_shape=jax.ShapeDtypeStruct((rows, P), z.dtype),
            in_specs=[vmem] * 6,
            out_specs=vmem,
            cost_estimate=apply_cost,
        )(z2, params["w1"], params["b1"], params["gb"],
          params["w2"], params["b2"])
        return out2.reshape(B, N, P)

    # ---------- gridded two-pass path (large B) ----------
    rows_blk = block_b * N
    grid = (B // block_b,)

    stats = pl.pallas_call(
        functools.partial(_fp_stats_kernel, n_ch=N),
        out_shape=jax.ShapeDtypeStruct((2, N, 1), jnp.float32),
        grid=grid,
        in_specs=[
            pl.BlockSpec((rows_blk, D), lambda i: (i, 0)),
            pl.BlockSpec((D, D), lambda i: (0, 0)),
            pl.BlockSpec((1, D), lambda i: (0, 0)),
        ],
        # Resident accumulator: constant block index across the (reduction)
        # grid axis -> axis must be "arbitrary".
        out_specs=pl.BlockSpec((2, N, 1), lambda i: (0, 0, 0)),
        compiler_params=pltpu.CompilerParams(
            dimension_semantics=("arbitrary",)),
        cost_estimate=pl.CostEstimate(
            flops=2 * rows * D * D + 4 * rows * D,
            transcendentals=0,
            bytes_accessed=4 * (rows * D + D * D + D + 2 * N)),
    )(z2, params["w1"], params["b1"])

    out2 = pl.pallas_call(
        functools.partial(_fp_apply_kernel, batch=B, n_ch=N),
        out_shape=jax.ShapeDtypeStruct((rows, P), z.dtype),
        grid=grid,
        in_specs=[
            pl.BlockSpec((2, N, 1), lambda i: (0, 0, 0)),
            pl.BlockSpec((rows_blk, D), lambda i: (i, 0)),
            pl.BlockSpec((D, D), lambda i: (0, 0)),
            pl.BlockSpec((1, D), lambda i: (0, 0)),
            pl.BlockSpec((2, N, 1), lambda i: (0, 0, 0)),
            pl.BlockSpec((D, P), lambda i: (0, 0)),
            pl.BlockSpec((1, P), lambda i: (0, 0)),
        ],
        out_specs=pl.BlockSpec((rows_blk, P), lambda i: (i, 0)),
        # "parallel" lets Mosaic shard the row tiles across both v7x
        # TensorCores; no effect (and no cost) on v5e/v6e.
        compiler_params=pltpu.CompilerParams(
            dimension_semantics=("parallel",)),
        cost_estimate=apply_cost,
    )(stats, z2, params["w1"], params["b1"], params["gb"],
      params["w2"], params["b2"])

    return out2.reshape(B, N, P)


# --------------------------------------------------------------------------
# Pure-JAX reference and parameter construction
# --------------------------------------------------------------------------
def reference(z, p):
    """Pure-JAX mirror of the PyTorch forward (training-mode BN)."""
    h = jnp.einsum("bnd,de->bne", z, p["w1"]) + p["b1"]
    mean = h.mean(axis=(0, 2), keepdims=True)
    var = ((h - mean) ** 2).mean(axis=(0, 2), keepdims=True)   # biased variance
    gamma = p["gb"][0]                        # (N, 1)
    beta = p["gb"][1]
    h = (h - mean) / jnp.sqrt(var + BN_EPS) * gamma + beta
    h = jnp.maximum(h, 0.0)
    return jnp.einsum("bnd,dp->bnp", h, p["w2"]) + p["b2"]


def make_params(key, latent_dim, out_dim, pred_len):
    P = out_dim * pred_len
    k1, k2, k3, k4, k5, k6 = jax.random.split(key, 6)
    s = 1.0 / jnp.sqrt(latent_dim)
    gamma = 1.0 + 0.1 * jax.random.normal(k3, (latent_dim, 1), jnp.float32)
    beta = 0.1 * jax.random.normal(k4, (latent_dim, 1), jnp.float32)
    return {
        # stored as (in_features, out_features) == PyTorch weight.T
        "w1": jax.random.uniform(k1, (latent_dim, latent_dim), jnp.float32, -s, s),
        "b1": jax.random.uniform(k2, (1, latent_dim), jnp.float32, -s, s),
        # gamma/beta packed into a single (2, N, 1) array -> one DMA.
        "gb": jnp.stack([gamma, beta], axis=0),
        "w2": jax.random.uniform(k5, (latent_dim, P), jnp.float32, -s, s),
        "b2": jax.random.uniform(k6, (1, P), jnp.float32, -s, s),
    }


if __name__ == "__main__":
    latent_dim = 32
    out_dim = 4
    pred_len = 32              # P = out_dim * pred_len = 128 -> lane-dense output
    N = latent_dim             # BatchNorm1d(latent_dim) on 3-D input forces N == latent_dim

    key = jax.random.PRNGKey(0)
    kz, kp, kz2 = jax.random.split(key, 3)
    params = make_params(kp, latent_dim, out_dim, pred_len)

    # Small demo shape: single-block, single-launch path.
    B = 2
    z = jax.random.normal(kz, (B, N, latent_dim), jnp.float32)
    out = jax.block_until_ready(future_predictor(z, params))
    ref = reference(z, params)
    assert out.shape == (B, N, pred_len * out_dim)
    assert jnp.allclose(out, ref, atol=1e-4, rtol=1e-4), "single-block mismatch"

    # Exercise the scaling path (two-pass BN + row-tiled "parallel" grid) at a
    # small, fast size by forcing a batch tile of 4.
    B2 = 16
    z_big = jax.random.normal(kz2, (B2, N, latent_dim), jnp.float32)
    out_big = jax.block_until_ready(future_predictor(z_big, params, block_b=4))
    ref_big = reference(z_big, params)
    assert out_big.shape == (B2, N, pred_len * out_dim)
    assert jnp.allclose(out_big, ref_big, atol=1e-4, rtol=1e-4), "gridded mismatch"

    print("KERNEL_OK")
</pallas_src>

<mosaic_0001>
module attributes {stable_mosaic.version = 11 : i64} {
  func.func @_fp_fused_kernel(%arg0: memref<64x32xf32, #tpu.memory_space<vmem>>, %arg1: memref<32x32xf32, #tpu.memory_space<vmem>>, %arg2: memref<1x32xf32, #tpu.memory_space<vmem>>, %arg3: memref<2x32x1xf32, #tpu.memory_space<vmem>>, %arg4: memref<32x128xf32, #tpu.memory_space<vmem>>, %arg5: memref<1x128xf32, #tpu.memory_space<vmem>>, %arg6: memref<64x128xf32, #tpu.memory_space<vmem>>) attributes {dimension_semantics = [], scalar_prefetch = 0 : i64, scratch_operands = 0 : i64, tpu.core_type = #tpu.core_type<tc>} {
    %c0 = arith.constant 0 : index
    %c0_0 = arith.constant 0 : index
    %0 = vector.load %arg0[%c0, %c0_0] : memref<64x32xf32, #tpu.memory_space<vmem>>, vector<64x32xf32>
    %c0_1 = arith.constant 0 : index
    %c0_2 = arith.constant 0 : index
    %1 = vector.load %arg1[%c0_1, %c0_2] : memref<32x32xf32, #tpu.memory_space<vmem>>, vector<32x32xf32>
    %cst = arith.constant dense<0.000000e+00> : vector<64x32xf32>
    %2 = tpu.matmul %0, %1, %cst {dimension_numbers = #tpu.dot_dimension_numbers<[1], [0], [0], [1], [0, 0, 1, 1], [], []>} : vector<64x32xf32>, vector<32x32xf32>, vector<64x32xf32> -> vector<64x32xf32>
    %c0_3 = arith.constant 0 : index
    %c0_4 = arith.constant 0 : index
    %3 = vector.load %arg2[%c0_3, %c0_4] : memref<1x32xf32, #tpu.memory_space<vmem>>, vector<1x32xf32>
    %4 = vector.broadcast %3 : vector<1x32xf32> to vector<64x32xf32>
    %5 = arith.addf %2, %4 : vector<64x32xf32>
    %6 = vector.shape_cast %5 : vector<64x32xf32> to vector<2x32x32xf32>
    %cst_5 = arith.constant dense<0.000000e+00> : vector<32x32xf32>
    %7 = vector.multi_reduction <add>, %6, %cst_5 [0] : vector<2x32x32xf32> to vector<32x32xf32>
    %8 = vector.shape_cast %7 : vector<32x32xf32> to vector<1x32x32xf32>
    %9 = arith.mulf %6, %6 : vector<2x32x32xf32>
    %cst_6 = arith.constant dense<0.000000e+00> : vector<32x32xf32>
    %10 = vector.multi_reduction <add>, %9, %cst_6 [0] : vector<2x32x32xf32> to vector<32x32xf32>
    %11 = vector.shape_cast %10 : vector<32x32xf32> to vector<1x32x32xf32>
    %cst_7 = arith.constant dense<0.000000e+00> : vector<1x32xf32>
    %12 = vector.multi_reduction <add>, %8, %cst_7 [2] : vector<1x32x32xf32> to vector<1x32xf32>
    %13 = vector.shape_cast %12 : vector<1x32xf32> to vector<1x32x1xf32>
    %cst_8 = arith.constant 1.562500e-02 : f32
    %14 = vector.broadcast %cst_8 : f32 to vector<1x32x1xf32>
    %15 = arith.mulf %13, %14 : vector<1x32x1xf32>
    %cst_9 = arith.constant dense<0.000000e+00> : vector<1x32xf32>
    %16 = vector.multi_reduction <add>, %11, %cst_9 [2] : vector<1x32x32xf32> to vector<1x32xf32>
    %17 = vector.shape_cast %16 : vector<1x32xf32> to vector<1x32x1xf32>
    %cst_10 = arith.constant 1.562500e-02 : f32
    %18 = vector.broadcast %cst_10 : f32 to vector<1x32x1xf32>
    %19 = arith.mulf %17, %18 : vector<1x32x1xf32>
    %20 = arith.mulf %15, %15 : vector<1x32x1xf32>
    %21 = arith.subf %19, %20 : vector<1x32x1xf32>
    %c0_11 = arith.constant 0 : index
    %c0_12 = arith.constant 0 : index
    %c0_13 = arith.constant 0 : index
    %22 = vector.load %arg3[%c0_11, %c0_12, %c0_13] : memref<2x32x1xf32, #tpu.memory_space<vmem>>, vector<1x32x1xf32>
    %23 = vector.shape_cast %22 : vector<1x32x1xf32> to vector<32x1xf32>
    %c1 = arith.constant 1 : index
    %c0_14 = arith.constant 0 : index
    %c0_15 = arith.constant 0 : index
    %24 = vector.load %arg3[%c1, %c0_14, %c0_15] : memref<2x32x1xf32, #tpu.memory_space<vmem>>, vector<1x32x1xf32>
    %25 = vector.shape_cast %24 : vector<1x32x1xf32> to vector<32x1xf32>
    %cst_16 = arith.constant 9.99999974E-6 : f32
    %26 = vector.broadcast %cst_16 : f32 to vector<1x32x1xf32>
    %27 = arith.addf %21, %26 : vector<1x32x1xf32>
    %28 = math.rsqrt %27 : vector<1x32x1xf32>
    %29 = vector.shape_cast %23 : vector<32x1xf32> to vector<1x32x1xf32>
    %30 = arith.mulf %29, %28 : vector<1x32x1xf32>
    %31 = arith.mulf %15, %30 : vector<1x32x1xf32>
    %32 = vector.shape_cast %25 : vector<32x1xf32> to vector<1x32x1xf32>
    %33 = arith.subf %32, %31 : vector<1x32x1xf32>
    %34 = vector.broadcast %30 : vector<1x32x1xf32> to vector<2x32x32xf32>
    %35 = arith.mulf %6, %34 : vector<2x32x32xf32>
    %36 = vector.broadcast %33 : vector<1x32x1xf32> to vector<2x32x32xf32>
    %37 = arith.addf %35, %36 : vector<2x32x32xf32>
    %cst_17 = arith.constant 0.000000e+00 : f32
    %38 = vector.broadcast %cst_17 : f32 to vector<2x32x32xf32>
    %39 = arith.maximumf %37, %38 : vector<2x32x32xf32>
    %40 = vector.shape_cast %39 : vector<2x32x32xf32> to vector<64x32xf32>
    %c0_18 = arith.constant 0 : index
    %c0_19 = arith.constant 0 : index
    %41 = vector.load %arg4[%c0_18, %c0_19] : memref<32x128xf32, #tpu.memory_space<vmem>>, vector<32x128xf32>
    %cst_20 = arith.constant dense<0.000000e+00> : vector<64x128xf32>
    %42 = tpu.matmul %40, %41, %cst_20 {dimension_numbers = #tpu.dot_dimension_numbers<[1], [0], [0], [1], [0, 0, 1, 1], [], []>} : vector<64x32xf32>, vector<32x128xf32>, vector<64x128xf32> -> vector<64x128xf32>
    %c0_21 = arith.constant 0 : index
    %c0_22 = arith.constant 0 : index
    %43 = vector.load %arg5[%c0_21, %c0_22] : memref<1x128xf32, #tpu.memory_space<vmem>>, vector<1x128xf32>
    %44 = vector.broadcast %43 : vector<1x128xf32> to vector<64x128xf32>
    %45 = arith.addf %42, %44 : vector<64x128xf32>
    %c0_23 = arith.constant 0 : index
    %c0_24 = arith.constant 0 : index
    %46 = vector.load %arg6[%c0_23, %c0_24] : memref<64x128xf32, #tpu.memory_space<vmem>>, vector<64x128xf32>
    tpu.vector_store %arg6[%c0_23, %c0_24], %45 {strides = array<i32>} : memref<64x128xf32, #tpu.memory_space<vmem>>, vector<64x128xf32>,
    return
  }
}

</mosaic_0001>

<bundles_post_ra>
// kernel: tpu_custom_call.1
= control target key start
LH: loop header
LB: loop body
LE: loop exit
PB: predicated region body
PF: predicated region fallthrough
CT: control target
= control target key end

     0   :  { %vm43_vm0 = vcmask 261120   ;;  %s859_s0 = inlined_call_operand.vmem [shape: f32[64,32], index: 0, kind: input, shape index: {}]   ;;  %s860_s1 = inlined_call_operand.vmem [shape: f32[32,32], index: 1, kind: input, shape index: {}]   ;;  %s861_s2 = inlined_call_operand.vmem [shape: f32[1,32], index: 2, kind: input, shape index: {}]   ;;  %s862_s3 = inlined_call_operand.vmem [shape: f32[2,32,1], index: 3, kind: input, shape index: {}]   ;;  %s863_s4 = inlined_call_operand.vmem [shape: f32[32,128], index: 4, kind: input, shape index: {}]   ;;  %s864_s5 = inlined_call_operand.vmem [shape: f32[1,128], index: 5, kind: input, shape index: {}]   ;;  %s865_s6 = inlined_call_operand.hbm [shape: f32[64,128], index: 6, kind: output, shape index: {}]  }
   0x1   :  { %v32_v0 = vld [vmem:[%s860_s1] sm:$0xff]  ;;  %v33_v1 = vld [vmem:[%s860_s1 + $0x8] sm:$0xff]  ;;  %v34_v2 = vld [vmem:[%s860_s1 + $0x10] sm:$0xff] }
   0x2   :  { %v588_v3 = vpack.c.bf16 %v33_v1, %v32_v0  ;;  %v35_v4 = vld [vmem:[%s860_s1 + $0x18] sm:$0xff]  ;;  %v24_v5 = vld [vmem:[%s859_s0] sm:$0xff] }
   0x3   :  { %v592_v6 = vpack.c.bf16 %v35_v4, %v34_v2  ;;  %556 = vmatprep.mubr.msk.f32.mxu0 %vm43_vm0, %v24_v5 }
   0x4   :  { %589 = vmatprep.subr.bf16.mxu0 %v588_v3 }
   0x5   :  { %591 = vmatpush3.bf16.msra.mxu0 %v588_v3 }
   0x6   :  { %11 = vsyncpa [#allocation3], 0  ;;  %593 = vmatprep.subr.bf16.mxu0 %v592_v6  ;;  %v25_v7 = vld [vmem:[%s859_s0 + $0x8] sm:$0xff]  ;;  %v26_v8 = vld [vmem:[%s859_s0 + $0x10] sm:$0xff]  ;;  %s643_s19 = smov [#allocation2]  }
   0x7   :  { %v27_v9 = vld [vmem:[%s859_s0 + $0x18] sm:$0xff]  ;;  %v28_v10 = vld [vmem:[%s859_s0 + $0x20] sm:$0xff]  ;;  %v29_v11 = vld [vmem:[%s859_s0 + $0x28] sm:$0xff]  ;;  %s491_s20 = sshll.u32 %s643_s19, 4  ;;  %s492_s20 = int_to_ptr.vmem [resolvable:$true] %s491_s20 }
   0x8   :  { %v30_v12 = vld [vmem:[%s859_s0 + $0x30] sm:$0xff]  ;;  %v31_v13 = vld [vmem:[%s859_s0 + $0x38] sm:$0xff]  ;;  %v502_v15 = vld [vmem:[%s861_s2] ss:$0 sm:$0xff]  ;;  %p623_p1 = scmp.lt.s32.totalorder %s492_s20, %s492_s20 }
   0x9   :  { %595 = vmatpush3.bf16.msra.mxu0 %v592_v6 }
   0xc   :  { %557 = vmatmul.mubr.msk.f32.vlgmr.msra.gmra.mrb[0].mxu0 %vm43_vm0, %v25_v7  ;;  %v642_v7 = vmov 0  }
   0xd   :  { %559 = vmatprep.mubr.msk.f32.mxu0 %vm43_vm0, %v26_v8  ;;  %609 = vset.pattern.permute.xlu1 %v642_v7 }
   0xe   :  { %608 = vset.pattern.permute.xlu0 %v642_v7 }
  0x10   :  { %560 = vmatmul.mubr.msk.f32.gmra.mrb[2].mxu0 %vm43_vm0, %v27_v9 }
  0x11   :  { %562 = vmatprep.mubr.msk.f32.mxu0 %vm43_vm0, %v28_v10 }
  0x14   :  { %563 = vmatmul.mubr.msk.f32.gmra.mrb[4].mxu0 %vm43_vm0, %v29_v11 }
  0x15   :  { %565 = vmatprep.mubr.msk.f32.mxu0 %vm43_vm0, %v30_v12 }
  0x18   :  { %566 = vmatmul.mubr.msk.f32.gmra.mrb[6].mxu0 %vm43_vm0, %v31_v13 }
  0xdf   :  { %v558_v14 = vpop.f32.mrb[0].mxu0 }
  0xe0   :  { %v134_v16 = vpop.f32.mrb[1].mxu0  ;;  %v728_v17 = vadd.f32 %v558_v14, %v502_v15 }
  0xe1   :  { %v730_v20 = vadd.f32 %v502_v15, %v134_v16 }
  0xe2   :  { %v186_v22 = vmul.f32 %v728_v17, %v728_v17  ;;  %v176_v26 = vsel %vm43_vm0, %v728_v17, 0.0 }
  0xe3   :  { %v561_v18 = vpop.f32.mrb[2].mxu0  ;;  %v185_v27 = vmul.f32 %v730_v20, %v730_v20  ;;  %v173_v30 = vsel %vm43_vm0, %v730_v20, 0.0 }
  0xe4   :  { %v144_v19 = vpop.f32.mrb[3].mxu0  ;;  %v196_v34 = vsel %vm43_vm0, %v186_v22, 0.0  ;;  %v762_v45 = vadd.f32 %v561_v18, %v502_v15 }
  0xe5   :  { %v753_v36 = vadd.f32 %v502_v15, %v144_v19  ;;  %v193_v46 = vsel %vm43_vm0, %v185_v27, 0.0 }
  0xe6   :  { %v188_v57 = vmul.f32 %v762_v45, %v762_v45  ;;  %v182_v58 = vsel %vm43_vm0, %v762_v45, 0.0 }
  0xe7   :  { %v564_v21 = vpop.f32.mrb[4].mxu0  ;;  %v187_v51 = vmul.f32 %v753_v36, %v753_v36  ;;  %v179_v53 = vsel %vm43_vm0, %v753_v36, 0.0 }
  0xe8   :  { %v734_v23 = vadd.f32 %v564_v21, %v502_v15  ;;  %v154_v24 = vpop.f32.mrb[5].mxu0  ;;  %v202_v2 = vsel %vm43_vm0, %v188_v57, 0.0  ;;  %v338_v57 = vld [vmem:[%s863_s4] sm:$0xff] }
  0xe9   :  { %v736_v25 = vadd.f32 %v502_v15, %v154_v24  ;;  %v199_v62 = vsel %vm43_vm0, %v187_v51, 0.0 }
  0xea   :  { %v177_v28 = vsel %vm43_vm0, %v734_v23, 0.0  ;;  %v190_v29 = vmul.f32 %v734_v23, %v734_v23 }
  0xeb   :  { %v189_v31 = vmul.f32 %v736_v25, %v736_v25  ;;  %v567_v32 = vpop.f32.mrb[6].mxu0  ;;  %v178_v33 = vadd.f32 %v177_v28, %v176_v26  ;;  %v174_v35 = vsel %vm43_vm0, %v736_v25, 0.0 }
  0xec   :  { %v755_v37 = vadd.f32 %v567_v32, %v502_v15  ;;  %v164_v38 = vpop.f32.mrb[7].mxu0  ;;  %v197_v39 = vsel %vm43_vm0, %v190_v29, 0.0  ;;  %v175_v40 = vadd.f32 %v174_v35, %v173_v30 }
  0xed   :  { %v758_v41 = vadd.f32 %v502_v15, %v164_v38  ;;  %v208_v42 = vsel %vm43_vm0, %v178_v33, 0.0  ;;  %v198_v43 = vadd.f32 %v197_v39, %v196_v34  ;;  %v194_v44 = vsel %vm43_vm0, %v189_v31, 0.0 }
  0xee   :  { %209 = vadd.xlane.f32.xlu0 %v208_v42  ;;  %v195_v49 = vadd.f32 %v194_v44, %v193_v46  ;;  %v192_v52 = vmul.f32 %v755_v37, %v755_v37  ;;  %v183_v54 = vsel %vm43_vm0, %v755_v37, 0.0  ;;  %v205_v55 = vsel %vm43_vm0, %v175_v40, 0.0  ;;  %v246_v40 = vld [vmem:[%s862_s3 + $0x8] sm:$0xff] }
  0xef   :  { %v191_v47 = vmul.f32 %v758_v41, %v758_v41  ;;  %v224_v48 = vsel %vm43_vm0, %v198_v43, 0.0  ;;  %v180_v50 = vsel %vm43_vm0, %v758_v41, 0.0  ;;  %v184_v61 = vadd.f32 %v183_v54, %v182_v58  ;;  %v339_v58 = vld [vmem:[%s863_s4 + $0x8] sm:$0xff] }
  0xf0   :  { %225 = vadd.xlane.f32.xlu1 %v224_v48  ;;  %v181_v56 = vadd.f32 %v180_v50, %v179_v53  ;;  %v221_v60 = vsel %vm43_vm0, %v195_v49, 0.0  ;;  %v203_v63 = vsel %vm43_vm0, %v192_v52, 0.0  ;;  %v245_v48 = vld [vmem:[%s862_s3] sm:$0xff]  ;;  %v248_v53 = vld [vmem:[%s862_s3 + $0x18] sm:$0xff] }
  0xf1   :  { %v200_v59 = vsel %vm43_vm0, %v191_v47, 0.0  ;;  %v214_v3 = vsel %vm43_vm0, %v184_v61, 0.0  ;;  %v204_v4 = vadd.f32 %v203_v63, %v202_v2  ;;  %v512_v47 = vld [vmem:[%s862_s3 + $0x28] sm:$0xff]  ;;  %v247_v61 = vld [vmem:[%s862_s3 + $0x10] sm:$0xff]  ;;  %v341_v2 = vld [vmem:[%s863_s4 + $0x18] sm:$0xff] }
  0xf2   :  { %206 = vadd.xlane.f32.xlu0 %v205_v55  ;;  %v211_v0 = vsel %vm43_vm0, %v181_v56, 0.0  ;;  %v201_v1 = vadd.f32 %v200_v59, %v199_v62  ;;  %v596_v62 = vpack.c.bf16 %v339_v58, %v338_v57 }
  0xf3   :  { %v230_v6 = vsel %vm43_vm0, %v204_v4, 0.0 }
  0xf4   :  { %222 = vadd.xlane.f32.xlu1 %v221_v60  ;;  %v227_v5 = vsel %vm43_vm0, %v201_v1, 0.0  ;;  %v511_v60 = vld [vmem:[%s862_s3 + $0x20] sm:$0xff]  ;;  %597 = vmatprep.subr.bf16.mxu1 %v596_v62  ;;  %v340_v1 = vld [vmem:[%s863_s4 + $0x10] sm:$0xff] }
  0xf5   :  { %599 = vmatpush3.bf16.msra.mxu1 %v596_v62 }
  0xf6   :  { %212 = vadd.xlane.f32.xlu0 %v211_v0 }
  0xf8   :  { %215 = vadd.xlane.f32.xlu1 %v214_v3  ;;  %v600_v3 = vpack.c.bf16 %v341_v2, %v340_v1 }
  0xfa   :  { %228 = vadd.xlane.f32.xlu0 %v227_v5  ;;  %601 = vmatprep.subr.bf16.mxu1 %v600_v3  ;;  %v513_v5 = vld [vmem:[%s862_s3 + $0x30] sm:$0xff] }
  0xfb   :  { %603 = vmatpush3.bf16.msra.mxu1 %v600_v3 }
  0xfc   :  { %231 = vadd.xlane.f32.xlu1 %v230_v6 }
 0x17b   :  { %v210_v8 = vpop.xlane.xlu0 %209 }
 0x17c   :  { %v218_v9 = vmul.f32 0.015625, %v210_v8  ;;  %v514_v8 = vld [vmem:[%s862_s3 + $0x38] sm:$0xff] }
 0x17d   :  { %v226_v10 = vpop.xlane.xlu1 %225 }
 0x17e   :  { %v238_v11 = vmul.f32 %v218_v9, %v218_v9  ;;  %v234_v12 = vmul.f32 0.015625, %v226_v10 }
 0x17f   :  { %v207_v13 = vpop.xlane.xlu0 %206 }
 0x180   :  { %v242_v14 = vsub.f32 %v234_v12, %v238_v11  ;;  %v217_v15 = vmul.f32 0.015625, %v207_v13 }
 0x181   :  { %v223_v16 = vpop.xlane.xlu1 %222 }
 0x182   :  { %v255_v18 = vadd.f32 1e-05, %v242_v14  ;;  %v237_v19 = vmul.f32 %v217_v15, %v217_v15  ;;  %v233_v21 = vmul.f32 0.015625, %v223_v16 }
 0x183   :  { %v213_v22 = vpop.xlane.xlu0 %212 }
 0x184   :  { %610 = vrsqrt.f32 %v255_v18  ;;  %v241_v24 = vsub.f32 %v233_v21, %v237_v19  ;;  %v219_v26 = vmul.f32 0.015625, %v213_v22 }
 0x185   :  { %v216_v27 = vpop.xlane.xlu1 %215 }
 0x186   :  { %v254_v28 = vadd.f32 1e-05, %v241_v24  ;;  %v220_v29 = vmul.f32 0.015625, %v216_v27  ;;  %v239_v31 = vmul.f32 %v219_v26, %v219_v26 }
 0x187   :  { %v229_v30 = vpop.xlane.xlu0 %228 }
 0x188   :  { %612 = vrsqrt.f32 %v254_v28  ;;  %v235_v32 = vmul.f32 0.015625, %v229_v30  ;;  %v240_v34 = vmul.f32 %v220_v29, %v220_v29 }
 0x189   :  { %v232_v33 = vpop.xlane.xlu1 %231 }
 0x18a   :  { %v243_v35 = vsub.f32 %v235_v32, %v239_v31  ;;  %v236_v38 = vmul.f32 0.015625, %v232_v33 }
 0x18c   :  { %v244_v39 = vsub.f32 %v236_v38, %v240_v34  ;;  %v256_v43 = vadd.f32 1e-05, %v243_v35 }
 0x18e   :  { %v611_v42 = vpop.eup %610  ;;  %v257_v44 = vadd.f32 1e-05, %v244_v39 }
 0x18f   :  { %v263_v46 = vmul.f32 %v611_v42, %v246_v40 }
 0x190   :  { %614 = vrsqrt.f32 %v257_v44 }
 0x191   :  { %281 = vperm.xlu1 %609, %v263_v46   ;;  %v267_v49 = vmul.f32 %v263_v46, %v218_v9  ;;  %616 = vrsqrt.f32 %v256_v43 }
 0x192   :  { %v613_v50 = vpop.eup %612 }
 0x193   :  { %v271_v51 = vsub.f32 %v512_v47, %v267_v49  ;;  %v262_v52 = vmul.f32 %v613_v50, %v245_v48 }
 0x195   :  { %309 = vperm.xlu1 %609, %v271_v51   ;;  %276 = vperm.xlu0 %608, %v262_v52   ;;  %v266_v56 = vmul.f32 %v262_v52, %v217_v15 }
 0x197   :  { %v270_v63 = vsub.f32 %v511_v60, %v266_v56 }
 0x19a   :  { %v615_v54 = vpop.eup %614 }
 0x19b   :  { %v265_v55 = vmul.f32 %v615_v54, %v248_v53  ;;  %v617_v59 = vpop.eup %616 }
 0x19c   :  { %v264_v0 = vmul.f32 %v617_v59, %v247_v61 }
 0x19d   :  { %291 = vperm.xlu1 %609, %v265_v55   ;;  %v269_v7 = vmul.f32 %v265_v55, %v220_v29 }
 0x19e   :  { %v268_v4 = vmul.f32 %v264_v0, %v219_v26 }
 0x19f   :  { %v273_v9 = vsub.f32 %v514_v8, %v269_v7 }
 0x1a0   :  { %v272_v6 = vsub.f32 %v513_v5, %v268_v4 }
 0x1a1   :  { %304 = vperm.xlu1 %609, %v270_v63  }
 0x1a5   :  { %286 = vperm.xlu1 %609, %v264_v0  }
 0x1a9   :  { %314 = vperm.xlu1 %609, %v272_v6  }
 0x1ad   :  { %319 = vperm.xlu1 %609, %v273_v9  }
 0x210   :  { %v282_v10 = vpop.permute.xlu1 %281 }
 0x211   :  { %v295_v14 = vmul.f32 %v282_v10, %v728_v17  ;;  %v299_v32 = vmul.f32 %v282_v10, %v734_v23 }
 0x214   :  { %v310_v11 = vpop.permute.xlu1 %309  ;;  %v277_v12 = vpop.permute.xlu0 %276 }
 0x215   :  { %v294_v15 = vmul.f32 %v277_v12, %v730_v20  ;;  %v323_v16 = vadd.f32 %v310_v11, %v295_v14  ;;  %v298_v29 = vmul.f32 %v277_v12, %v736_v25  ;;  %v327_v35 = vadd.f32 %v310_v11, %v299_v32 }
 0x217   :  { %v331_v22 = vmax.f32 %v323_v16, 0.0  ;;  %v335_v25 = vmax.f32 %v327_v35, 0.0 }
 0x21c   :  { %v292_v13 = vpop.permute.xlu1 %291 }
 0x21d   :  { %v297_v17 = vmul.f32 %v292_v13, %v762_v45  ;;  %v301_v40 = vmul.f32 %v292_v13, %v755_v37 }
 0x220   :  { %v305_v18 = vpop.permute.xlu1 %304 }
 0x221   :  { %v322_v19 = vadd.f32 %v305_v18, %v294_v15  ;;  %v326_v20 = vadd.f32 %v305_v18, %v298_v29 }
 0x223   :  { %v330_v21 = vmax.f32 %v322_v19, 0.0  ;;  %v334_v39 = vmax.f32 %v326_v20, 0.0 }
 0x224   :  { %v287_v24 = vpop.permute.xlu1 %286 }
 0x225   :  { %576 = vmatprep.mubr.msk.f32.mxu1 %vm43_vm0, %v330_v21  ;;  %v296_v26 = vmul.f32 %v287_v24, %v753_v36  ;;  %v300_v34 = vmul.f32 %v287_v24, %v758_v41  ;;  %v515_v41 = vld [vmem:[%s864_s5] ss:$0 sm:$0xff]  ;;  %s618_s5 = scalar_lea.vmem %s492_s20, 1024 }
 0x226   :  { %577 = vmatmul.mubr.msk.f32.vlgmr.msra.gmra.mrb[0].mxu1 %vm43_vm0, %v331_v22  ;;  %p619_p0 = scmp.ne.s32.totalorder %s492_s20, %s618_s5  ;;  %p624_p2 = scmp.lt.s32.totalorder %s618_s5, %s618_s5 }
 0x228   :  { %v315_v27 = vpop.permute.xlu1 %314  ;;  %p625_p3 = por %p624_p2, %p623_p1 }
 0x229   :  { %v324_v28 = vadd.f32 %v315_v27, %v296_v26  ;;  %v328_v36 = vadd.f32 %v315_v27, %v300_v34 }
 0x22a   :  { %p626_p4 = pnand %p625_p3, %p619_p0 }
 0x22b   :  { %v332_v30 = vmax.f32 %v324_v28, 0.0  ;;  %v336_v42 = vmax.f32 %v328_v36, 0.0 }
 0x22c   :  { %v320_v31 = vpop.permute.xlu1 %319 }
 0x22d   :  { %v325_v33 = vadd.f32 %v320_v31, %v297_v17  ;;  %579 = vmatprep.mubr.msk.f32.mxu1 %vm43_vm0, %v332_v30  ;;  %v329_v45 = vadd.f32 %v320_v31, %v301_v40 }
 0x22f   :  { %v333_v38 = vmax.f32 %v325_v33, 0.0  ;;  %v337_v23 = vmax.f32 %v329_v45, 0.0 }
 0x231   :  { %580 = vmatmul.mubr.msk.f32.gmra.mrb[2].mxu1 %vm43_vm0, %v333_v38 }
 0x232   :  { %582 = vmatprep.mubr.msk.f32.mxu1 %vm43_vm0, %v334_v39 }
 0x235   :  { %583 = vmatmul.mubr.msk.f32.gmra.mrb[4].mxu1 %vm43_vm0, %v335_v25 }
 0x236   :  { %585 = vmatprep.mubr.msk.f32.mxu1 %vm43_vm0, %v336_v42 }
 0x239   :  { %586 = vmatmul.mubr.msk.f32.gmra.mrb[6].mxu1 %vm43_vm0, %v337_v23 }
 0x2f9   :  { %v578_v43 = vpop.f32.mrb[0].mxu1 }
 0x2fa   :  { %v445_v37 = vadd.f32 %v578_v43, %v515_v41  ;;  %v439_v44 = vpop.f32.mrb[1].mxu1 }
 0x2fb   :  { %v440_v46 = vadd.f32 %v515_v41, %v439_v44 }
 0x2fc   :  { %479 = vst [vmem:[#allocation2 + $0x8] sm:$0xff] %v445_v37 }
 0x2fd   :  { %478 = vst [vmem:[#allocation2] sm:$0xff] %v440_v46 }
 0x304   :  { %v581_v47 = vpop.f32.mrb[2].mxu1 }
 0x305   :  { %v455_v48 = vadd.f32 %v581_v47, %v515_v41  ;;  %v449_v49 = vpop.f32.mrb[3].mxu1 }
 0x306   :  { %v450_v50 = vadd.f32 %v515_v41, %v449_v49 }
 0x307   :  { %481 = vst [vmem:[#allocation2 + $0x18] sm:$0xff] %v455_v48 }
 0x308   :  { %480 = vst [vmem:[#allocation2 + $0x10] sm:$0xff] %v450_v50  ;;  %v584_v51 = vpop.f32.mrb[4].mxu1 }
 0x309   :  { %v465_v52 = vadd.f32 %v584_v51, %v515_v41  ;;  %v459_v53 = vpop.f32.mrb[5].mxu1 }
 0x30a   :  { %v460_v54 = vadd.f32 %v515_v41, %v459_v53 }
 0x30b   :  { %483 = vst [vmem:[#allocation2 + $0x28] sm:$0xff] %v465_v52 }
 0x30c   :  { %482 = vst [vmem:[#allocation2 + $0x20] sm:$0xff] %v460_v54  ;;  %v587_v55 = vpop.f32.mrb[6].mxu1 }
 0x30d   :  { %v475_v56 = vadd.f32 %v587_v55, %v515_v41  ;;  %v469_v57 = vpop.f32.mrb[7].mxu1 }
 0x30e   :  { %v470_v58 = vadd.f32 %v515_v41, %v469_v57 }
 0x30f   :  { %485 = vst [vmem:[#allocation2 + $0x38] sm:$0xff] %v475_v56 }
 0x310   :  { %484 = vst [vmem:[#allocation2 + $0x30] sm:$0xff] %v470_v58 }
 0x311   :  { %629 = shalt.err (!%p626_p4)
}
 0x312   :  { %s630_s2 = scalar_lea.hbm %s865_s6, 1024 }
 0x313   :  { %p631_p5 = scmp.ne.s32.totalorder %s865_s6, %s630_s2  ;;  %p634_p6 = scmp.lt.u32.totalorder %s630_s2, %s865_s6 }
 0x315   :  { %p636_p7 = pnand %p634_p6, %p631_p5 }
 0x317   :  { %639 = shalt.err (!%p636_p7)
}
 0x318   :  { %s644_s26 = smov 128   ;;  %s645_s27 = smov 8  }
 0x319   :  { %497 = dma.vmem_to_hbm [thread:$0]  %s492_s20, 1024, %s865_s6, [#allocation3], %s644_s26, %s644_s26, %s645_s27  }
 0x31a   :  { %640 = dma.done.wait [#allocation3], 1024  }
 0x31b   :  { %641 = vsyncadd [#allocation3], 4294966272 }
 0x31c   :  { %501 = vsyncpa [#allocation3], 1 }

</bundles_post_ra>
